<compile_context>
chip_gen: v7x
topology: tpu7x:2x2x1
jax: 0.10.0
libtpu: 0.0.40
codegen_flags: <defaults>
</compile_context>

<pallas_src>
import functools

import jax
import jax.numpy as jnp
from jax import lax
from jax.experimental import pallas as pl
from jax.experimental.pallas import tpu as pltpu


def _round_up(x, m):
    return (x + m - 1) // m * m


# ----------------------------------------------------------------------------
# Pallas kernels
# ----------------------------------------------------------------------------
def _linear_kernel(x_ref, w_ref, b_ref, o_ref, acc_ref):
    """o = x @ w + b, K-tiled: grid = (V tiles, N tiles, K tiles), K innermost."""
    @pl.when(pl.program_id(2) == 0)
    def _():
        acc_ref[...] = jnp.zeros_like(acc_ref)

    acc_ref[...] += jnp.dot(x_ref[...], w_ref[...],
                            preferred_element_type=jnp.float32)

    @pl.when(pl.program_id(2) == pl.num_programs(2) - 1)
    def _():
        o_ref[...] = (acc_ref[...] + b_ref[...].astype(jnp.float32)
                      ).astype(o_ref.dtype)


def _lstm_recurrence_kernel(gx_ref, whh_ref, h0_ref, c0_ref,
                            out_ref, hT_ref, cT_ref, *,
                            hidden, chunk, seq_len, masked, mxu_dtype, unroll):
    """Recurrent part of one LSTM layer for one (batch block, time chunk).

    gx_ref:  (TT, bb, 4Hp)  precomputed x @ W_ih + (b_ih + b_hh), gates [i,f,o,g]
    whh_ref: (Hp, 4Hp)      recurrent weights (pre-transposed, mxu dtype, resident)
    h0/c0:   (bb, Hp)       initial state (fp32)
    out_ref: (TT, bb, Hp)   per-step hidden output for this chunk
    hT/cT:   (bb, Hp)       resident fp32 output blocks; cross-chunk carry.
    Grid: (batch blocks [parallel], time chunks [arbitrary]).
    """
    Hp = hidden

    @pl.when(pl.program_id(1) == 0)
    def _():
        hT_ref[...] = h0_ref[...]
        cT_ref[...] = c0_ref[...]

    w_hh = whh_ref[...]                       # load once per chunk, mxu dtype
    t_base = pl.program_id(1) * chunk

    def step(t, carry):
        h_prev, c_prev = carry                # fp32 state
        gates = gx_ref[t].astype(jnp.float32) + jnp.dot(
            h_prev.astype(mxu_dtype), w_hh,
            preferred_element_type=jnp.float32)                 # (bb, 4Hp) fp32
        # Packed gate order [i, f, o | g].
        # sigmoid(x) = 0.5*tanh(0.5x) + 0.5 -> a single EUP pass over the 3Hp slice.
        sig = 0.5 * jnp.tanh(0.5 * gates[:, :3 * Hp]) + 0.5
        g_g = jnp.tanh(gates[:, 3 * Hp:])
        i_g = sig[:, 0 * Hp:1 * Hp]
        f_g = sig[:, 1 * Hp:2 * Hp]
        o_g = sig[:, 2 * Hp:3 * Hp]
        c_new = f_g * c_prev + i_g * g_g
        h_new = o_g * jnp.tanh(c_new)
        if masked:  # static: only when T was padded to a multiple of the chunk
            valid = (t_base + t) < seq_len
            c_new = jnp.where(valid, c_new, c_prev)
            h_new = jnp.where(valid, h_new, h_prev)
        out_ref[t] = h_new.astype(out_ref.dtype)
        return h_new, c_new

    h_last, c_last = lax.fori_loop(0, chunk, step,
                                   (hT_ref[...], cT_ref[...]), unroll=unroll)
    hT_ref[...] = h_last
    cT_ref[...] = c_last


# ----------------------------------------------------------------------------
# Wrappers around pallas_call
# ----------------------------------------------------------------------------
def linear(x, w_t, b, *, out_dtype=jnp.float32, mxu_dtype=jnp.bfloat16,
           tm=256, tn=512, tk=1024):
    """x:(N,K) @ w_t:(K,V) + b:(1,V) -> (N,V).

    Grid = (V tiles [parallel], N tiles [parallel], K tiles [arbitrary/reduction]).
    Weight axis is outermost so, when K <= tk (the common case), the (K, tn) weight
    stripe is DMA'd from HBM exactly once and stays resident while the row tiles
    stream past; K-tiling only kicks in for very large K to bound VMEM.
    """
    N, K = x.shape
    Kw, V = w_t.shape
    assert K == Kw
    tm_e = min(tm, _round_up(N, 8))
    tn_e = min(tn, _round_up(V, 128))       # lane-dense (>=128) output tiles
    tk_e = min(tk, _round_up(K, 128))
    Np, Kp, Vp = _round_up(N, tm_e), _round_up(K, tk_e), _round_up(V, tn_e)

    xp = jnp.pad(x, ((0, Np - N), (0, Kp - K))).astype(mxu_dtype)
    wp = jnp.pad(w_t, ((0, Kp - K), (0, Vp - V))).astype(mxu_dtype)
    bp = jnp.pad(b, ((0, 0), (0, Vp - V))).astype(jnp.float32)

    grid = (Vp // tn_e, Np // tm_e, Kp // tk_e)
    out = pl.pallas_call(
        _linear_kernel,
        out_shape=jax.ShapeDtypeStruct((Np, Vp), out_dtype),
        grid_spec=pltpu.PrefetchScalarGridSpec(
            num_scalar_prefetch=0,
            grid=grid,
            in_specs=[
                pl.BlockSpec((tm_e, tk_e), lambda j, i, k: (i, k)),
                pl.BlockSpec((tk_e, tn_e), lambda j, i, k: (k, j)),
                pl.BlockSpec((1, tn_e),    lambda j, i, k: (0, j)),
            ],
            out_specs=pl.BlockSpec((tm_e, tn_e), lambda j, i, k: (i, j)),
            scratch_shapes=[pltpu.VMEM((tm_e, tn_e), jnp.float32)],
        ),
        compiler_params=pltpu.CompilerParams(
            dimension_semantics=("parallel", "parallel", "arbitrary"),
            vmem_limit_bytes=64 * 1024 * 1024),
    )(xp, wp, bp)
    return out[:N, :V]


def _pick_batch_block(b_pad):
    """Split the (padded) batch into 2 parallel blocks when cleanly possible
    (feeds v7x's second TensorCore); otherwise one block."""
    half = b_pad // 2
    if half >= 8 and half % 8 == 0:
        return half
    return b_pad


def lstm_recurrence(gx_seq, w_hh_t, h0, c0, *, time_chunk=32,
                    mxu_dtype=jnp.bfloat16, out_dtype=jnp.bfloat16):
    """gx_seq:(T, Bp, 4Hp) precomputed input gates -> (out (T,Bp,Hp), hT, cT)."""
    T, Bp, G = gx_seq.shape
    Hp = h0.shape[-1]
    assert G == 4 * Hp and Bp % 8 == 0 and Hp % 128 == 0

    TT = min(time_chunk, T)
    T_pad = _round_up(T, TT)
    masked = T_pad != T
    if masked:
        gx_seq = jnp.pad(gx_seq, ((0, T_pad - T), (0, 0), (0, 0)))
    bb = _pick_batch_block(Bp)
    grid = (Bp // bb, T_pad // TT)
    unroll = TT if TT <= 8 else 4          # full unroll only for short/toy chunks

    kernel = functools.partial(
        _lstm_recurrence_kernel, hidden=Hp, chunk=TT, seq_len=T,
        masked=masked, mxu_dtype=mxu_dtype, unroll=unroll)

    out_shapes = (
        jax.ShapeDtypeStruct((T_pad, Bp, Hp), out_dtype),
        jax.ShapeDtypeStruct((Bp, Hp), jnp.float32),
        jax.ShapeDtypeStruct((Bp, Hp), jnp.float32),
    )
    out_seq, hT, cT = pl.pallas_call(
        kernel,
        out_shape=out_shapes,
        grid_spec=pltpu.PrefetchScalarGridSpec(
            num_scalar_prefetch=0,
            grid=grid,
            in_specs=[
                pl.BlockSpec((TT, bb, G), lambda b, c: (c, b, 0)),   # gx chunk
                pl.BlockSpec((Hp, G),     lambda b, c: (0, 0)),      # W_hh^T resident
                pl.BlockSpec((bb, Hp),    lambda b, c: (b, 0)),      # h0
                pl.BlockSpec((bb, Hp),    lambda b, c: (b, 0)),      # c0
            ],
            out_specs=[
                pl.BlockSpec((TT, bb, Hp), lambda b, c: (c, b, 0)),  # out chunk
                pl.BlockSpec((bb, Hp),     lambda b, c: (b, 0)),     # hT (carry)
                pl.BlockSpec((bb, Hp),     lambda b, c: (b, 0)),     # cT (carry)
            ],
        ),
        compiler_params=pltpu.CompilerParams(
            dimension_semantics=("parallel", "arbitrary"),
            vmem_limit_bytes=64 * 1024 * 1024),
    )(gx_seq, w_hh_t, h0, c0)
    if masked:
        out_seq = out_seq[:T]
    return out_seq, hT, cT


# ----------------------------------------------------------------------------
# Full model forward
# ----------------------------------------------------------------------------
def lstm_model_forward(kp, x_tokens, h0, c0, *, mxu_dtype=jnp.bfloat16,
                       act_dtype=jnp.bfloat16, time_chunk=32):
    """Mirrors LSTMmodel.forward(x, (h0, c0)) in eval mode.

    x_tokens: (B, T) int32;  h0, c0: (num_layers, B, H) float32.
    Returns (logits (B*T, vocab) fp32, (hT, cT) fp32).
    """
    B, T = x_tokens.shape
    H, Hp = kp["hidden"], kp["hidden_pad"]
    B_pad = _round_up(B, 8)

    # Embedding lookup (gather) - glue in plain JAX.
    emb = jnp.take(kp["embed"], x_tokens, axis=0)            # (B, T, E) fp32
    layer_in = jnp.transpose(emb, (1, 0, 2))                 # (T, B, E) time-major
    layer_in = jnp.pad(layer_in, ((0, 0), (0, B_pad - B), (0, 0)))

    h_finals, c_finals = [], []
    for l, lp in enumerate(kp["layers"]):
        T_, Bp_, F = layer_in.shape
        # Hoisted input projection: one big (T*Bp, 4Hp) MXU matmul (bias fused here).
        gx = linear(layer_in.reshape(T_ * Bp_, F), lp["w_ih_t"], lp["b"],
                    out_dtype=act_dtype, mxu_dtype=mxu_dtype)
        gx = gx.reshape(T_, Bp_, 4 * Hp)
        h0p = jnp.pad(h0[l], ((0, B_pad - B), (0, Hp - H))).astype(jnp.float32)
        c0p = jnp.pad(c0[l], ((0, B_pad - B), (0, Hp - H))).astype(jnp.float32)
        out_seq, hT, cT = lstm_recurrence(
            gx, lp["w_hh_t"], h0p, c0p, time_chunk=time_chunk,
            mxu_dtype=mxu_dtype, out_dtype=act_dtype)
        layer_in = out_seq                                   # (T, B_pad, Hp)
        h_finals.append(hT[:B, :H])
        c_finals.append(cT[:B, :H])

    out = jnp.transpose(layer_in, (1, 0, 2))[:B].reshape(B * T, Hp)
    # Dropout(p=0.5) in eval mode == identity.
    logits = linear(out, kp["lin_w_t"], kp["lin_b"],
                    out_dtype=jnp.float32, mxu_dtype=mxu_dtype)
    return logits, (jnp.stack(h_finals), jnp.stack(c_finals))


# ----------------------------------------------------------------------------
# Parameter init (PyTorch layout) + kernel packing
# ----------------------------------------------------------------------------
def init_torch_params(key, vocab_size, embed_size, hidden_size, num_layers):
    keys = jax.random.split(key, 3 + 4 * num_layers)
    params = {"hidden": hidden_size, "layers": []}
    params["embed"] = 0.1 * jax.random.normal(
        keys[0], (vocab_size, embed_size), jnp.float32)
    ki = 1
    for l in range(num_layers):
        in_sz = embed_size if l == 0 else hidden_size
        # PyTorch stores w_ih (4H, in), w_hh (4H, H), gate order [i,f,g,o].
        w_ih = 0.1 * jax.random.normal(keys[ki], (4 * hidden_size, in_sz), jnp.float32); ki += 1
        w_hh = 0.1 * jax.random.normal(keys[ki], (4 * hidden_size, hidden_size), jnp.float32); ki += 1
        b_ih = 0.1 * jax.random.normal(keys[ki], (4 * hidden_size,), jnp.float32); ki += 1
        b_hh = 0.1 * jax.random.normal(keys[ki], (4 * hidden_size,), jnp.float32); ki += 1
        params["layers"].append({"w_ih": w_ih, "w_hh": w_hh, "b_ih": b_ih, "b_hh": b_hh})
    params["lin_w"] = 0.1 * jax.random.normal(keys[ki], (vocab_size, hidden_size), jnp.float32)
    params["lin_b"] = 0.1 * jax.random.normal(keys[ki + 1], (vocab_size,), jnp.float32)
    return params


def _pack_gates(w, H, Hp):
    """PyTorch gate rows [i,f,g,o] (axis 0) -> kernel order [i,f,o,g], each gate
    block zero-padded H -> Hp along axis 0."""
    i, f, g, o = (w[k * H:(k + 1) * H] for k in range(4))
    pad_cfg = ((0, Hp - H),) + ((0, 0),) * (w.ndim - 1)
    return jnp.concatenate([jnp.pad(x, pad_cfg) for x in (i, f, o, g)], axis=0)


def pack_params(tp, *, mxu_dtype=jnp.bfloat16):
    """Kernel layout: transposed weights, gate order [i,f,o,g], per-gate H->Hp
    zero padding (so padded hidden lanes stay exactly zero through the
    recurrence), weights cast to the MXU dtype, biases kept fp32."""
    H = tp["hidden"]
    Hp = _round_up(H, 128)
    layers = []
    for l, lp in enumerate(tp["layers"]):
        w_ih_t = _pack_gates(lp["w_ih"], H, Hp).T            # (in, 4Hp)
        if l > 0:
            # previous layer emits Hp-wide activations; padded rows multiply zeros
            w_ih_t = jnp.pad(w_ih_t, ((0, Hp - H), (0, 0)))
        w_hh_t = _pack_gates(lp["w_hh"], H, Hp).T            # (H, 4Hp)
        w_hh_t = jnp.pad(w_hh_t, ((0, Hp - H), (0, 0)))      # (Hp, 4Hp)
        b = _pack_gates((lp["b_ih"] + lp["b_hh"])[:, None], H, Hp).reshape(1, 4 * Hp)
        layers.append({
            "w_ih_t": w_ih_t.astype(mxu_dtype),
            "w_hh_t": w_hh_t.astype(mxu_dtype),
            "b": b.astype(jnp.float32),
        })
    lin_w_t = jnp.pad(tp["lin_w"].T, ((0, Hp - H), (0, 0)))  # (Hp, V)
    return {
        "embed": tp["embed"],
        "layers": layers,
        "lin_w_t": lin_w_t.astype(mxu_dtype),
        "lin_b": tp["lin_b"].reshape(1, -1).astype(jnp.float32),
        "hidden": H,
        "hidden_pad": Hp,
    }


# ----------------------------------------------------------------------------
# Pure-JAX reference (PyTorch weight layout, [i,f,g,o] gate order, fp32)
# ----------------------------------------------------------------------------
def reference_forward(tp, x_tokens, h0, c0):
    B, T = x_tokens.shape
    H = tp["hidden"]
    hp = jax.lax.Precision.HIGHEST
    emb = jnp.take(tp["embed"], x_tokens, axis=0)
    layer_in = jnp.transpose(emb, (1, 0, 2))
    h_finals, c_finals = [], []
    for l, lp in enumerate(tp["layers"]):
        w_ih, w_hh = lp["w_ih"], lp["w_hh"]
        bias = lp["b_ih"] + lp["b_hh"]
        h, c = h0[l], c0[l]
        outs = []
        for t in range(T):
            gates = (jnp.dot(layer_in[t], w_ih.T, precision=hp)
                     + jnp.dot(h, w_hh.T, precision=hp) + bias)
            i_g = jax.nn.sigmoid(gates[:, 0 * H:1 * H])
            f_g = jax.nn.sigmoid(gates[:, 1 * H:2 * H])
            g_g = jnp.tanh(gates[:, 2 * H:3 * H])
            o_g = jax.nn.sigmoid(gates[:, 3 * H:4 * H])
            c = f_g * c + i_g * g_g
            h = o_g * jnp.tanh(c)
            outs.append(h)
        layer_in = jnp.stack(outs)
        h_finals.append(h)
        c_finals.append(c)
    out = jnp.transpose(layer_in, (1, 0, 2)).reshape(B * T, H)
    logits = jnp.dot(out, tp["lin_w"].T, precision=hp) + tp["lin_b"]
    return logits, (jnp.stack(h_finals), jnp.stack(c_finals))


if __name__ == "__main__":
    vocab_size, embed_size, hidden_size, num_layers = 32, 16, 32, 2
    B, T = 2, 8

    key = jax.random.PRNGKey(0)
    k_param, k_tok, k_h, k_c = jax.random.split(key, 4)

    tparams = init_torch_params(k_param, vocab_size, embed_size, hidden_size, num_layers)
    x_tokens = jax.random.randint(k_tok, (B, T), 0, vocab_size, dtype=jnp.int32)
    h0 = 0.1 * jax.random.normal(k_h, (num_layers, B, hidden_size), jnp.float32)
    c0 = 0.1 * jax.random.normal(k_c, (num_layers, B, hidden_size), jnp.float32)

    ref_logits, (ref_h, ref_c) = reference_forward(tparams, x_tokens, h0, c0)

    def max_diff(res):
        logits, (hT, cT) = res
        return max(float(jnp.max(jnp.abs(logits - ref_logits))),
                   float(jnp.max(jnp.abs(hT - ref_h))),
                   float(jnp.max(jnp.abs(cT - ref_c))))

    # 1) fp32 MXU path: tightened tolerance verifies gate repack / padding plumbing.
    #    (Remaining slack covers the TPU f32 matmul pass decomposition.)
    kp32 = pack_params(tparams, mxu_dtype=jnp.float32)
    res32 = lstm_model_forward(kp32, x_tokens, h0, c0,
                               mxu_dtype=jnp.float32, act_dtype=jnp.float32)
    jax.block_until_ready(res32)
    logits32, (h32, c32) = res32
    assert logits32.shape == (B * T, vocab_size)
    assert h32.shape == (num_layers, B, hidden_size)
    assert c32.shape == (num_layers, B, hidden_size)
    d32 = max_diff(res32)
    assert d32 < 5e-3, f"fp32 path mismatch vs reference: {d32}"

    # 2) bf16 fast path (rated MXU dtype; fp32 accumulation + fp32 cell state).
    kpbf = pack_params(tparams, mxu_dtype=jnp.bfloat16)
    resbf = lstm_model_forward(kpbf, x_tokens, h0, c0,
                               mxu_dtype=jnp.bfloat16, act_dtype=jnp.bfloat16)
    jax.block_until_ready(resbf)
    dbf = max_diff(resbf)
    assert resbf[0].shape == (B * T, vocab_size)
    assert dbf < 3e-2, f"bf16 path mismatch vs reference: {dbf}"

    print("KERNEL_OK")
</pallas_src>

<mosaic_0001>
module attributes {stable_mosaic.version = 11 : i64} {
  func.func @_linear_kernel(%arg0: i32, %arg1: i32, %arg2: i32, %arg3: memref<64x128xf32, #tpu.memory_space<vmem>>, %arg4: memref<128x512xf32, #tpu.memory_space<vmem>>, %arg5: memref<1x512xf32, #tpu.memory_space<vmem>>, %arg6: memref<64x512xf32, #tpu.memory_space<vmem>>, %arg7: memref<64x512xf32, #tpu.memory_space<vmem>>) attributes {dimension_semantics = [#tpu.dimension_semantics<parallel>, #tpu.dimension_semantics<parallel>, #tpu.dimension_semantics<arbitrary>], iteration_bounds = array<i64: 1, 1, 1>, scalar_prefetch = 0 : i64, scratch_operands = 1 : i64, tpu.core_type = #tpu.core_type<tc>, window_params = [{transform_indices = @transform_0, window_bounds = array<i64: 64, 128>}, {transform_indices = @transform_1, window_bounds = array<i64: 128, 512>}, {transform_indices = @transform_2, window_bounds = array<i64: 1, 512>}, {transform_indices = @transform_3, window_bounds = array<i64: 64, 512>}]} {
    %c0_i32 = arith.constant 0 : i32
    %0 = arith.cmpi eq, %arg2, %c0_i32 : i32
    %1 = arith.extui %0 : i1 to i32
    %c0_i32_0 = arith.constant 0 : i32
    %2 = arith.cmpi ne, %1, %c0_i32_0 : i32
    scf.if %2 {
      %cst_10 = arith.constant 0.000000e+00 : f32
      %12 = vector.broadcast %cst_10 : f32 to vector<64x512xf32>
      %c0_11 = arith.constant 0 : index
      %c0_12 = arith.constant 0 : index
      %13 = vector.load %arg7[%c0_11, %c0_12] : memref<64x512xf32, #tpu.memory_space<vmem>>, vector<64x512xf32>
      tpu.vector_store %arg7[%c0_11, %c0_12], %12 {strides = array<i32>} : memref<64x512xf32, #tpu.memory_space<vmem>>, vector<64x512xf32>,
    } else {
    }
    %c0 = arith.constant 0 : index
    %c0_1 = arith.constant 0 : index
    %3 = vector.load %arg7[%c0, %c0_1] : memref<64x512xf32, #tpu.memory_space<vmem>>, vector<64x512xf32>
    %c0_2 = arith.constant 0 : index
    %c0_3 = arith.constant 0 : index
    %4 = vector.load %arg3[%c0_2, %c0_3] : memref<64x128xf32, #tpu.memory_space<vmem>>, vector<64x128xf32>
    %c0_4 = arith.constant 0 : index
    %c0_5 = arith.constant 0 : index
    %5 = vector.load %arg4[%c0_4, %c0_5] : memref<128x512xf32, #tpu.memory_space<vmem>>, vector<128x512xf32>
    %cst = arith.constant dense<0.000000e+00> : vector<64x512xf32>
    %6 = tpu.matmul %4, %5, %cst {dimension_numbers = #tpu.dot_dimension_numbers<[1], [0], [0], [1], [0, 0, 1, 1], [], []>} : vector<64x128xf32>, vector<128x512xf32>, vector<64x512xf32> -> vector<64x512xf32>
    %7 = arith.addf %3, %6 : vector<64x512xf32>
    %c0_6 = arith.constant 0 : index
    %c0_7 = arith.constant 0 : index
    %8 = vector.load %arg7[%c0_6, %c0_7] : memref<64x512xf32, #tpu.memory_space<vmem>>, vector<64x512xf32>
    tpu.vector_store %arg7[%c0_6, %c0_7], %7 {strides = array<i32>} : memref<64x512xf32, #tpu.memory_space<vmem>>, vector<64x512xf32>,
    %c0_i32_8 = arith.constant 0 : i32
    %9 = arith.cmpi eq, %arg2, %c0_i32_8 : i32
    %10 = arith.extui %9 : i1 to i32
    %c0_i32_9 = arith.constant 0 : i32
    %11 = arith.cmpi ne, %10, %c0_i32_9 : i32
    scf.if %11 {
      %c0_10 = arith.constant 0 : index
      %c0_11 = arith.constant 0 : index
      %12 = vector.load %arg7[%c0_10, %c0_11] : memref<64x512xf32, #tpu.memory_space<vmem>>, vector<64x512xf32>
      %c0_12 = arith.constant 0 : index
      %c0_13 = arith.constant 0 : index
      %13 = vector.load %arg5[%c0_12, %c0_13] : memref<1x512xf32, #tpu.memory_space<vmem>>, vector<1x512xf32>
      %14 = vector.broadcast %13 : vector<1x512xf32> to vector<64x512xf32>
      %15 = arith.addf %12, %14 : vector<64x512xf32>
      %c0_14 = arith.constant 0 : index
      %c0_15 = arith.constant 0 : index
      %16 = vector.load %arg6[%c0_14, %c0_15] : memref<64x512xf32, #tpu.memory_space<vmem>>, vector<64x512xf32>
      tpu.vector_store %arg6[%c0_14, %c0_15], %15 {strides = array<i32>} : memref<64x512xf32, #tpu.memory_space<vmem>>, vector<64x512xf32>,
    } else {
    }
    return
  }
  func.func @transform_0(%arg0: i32, %arg1: i32, %arg2: i32) -> (i32, i32) {
    %c0_i32 = arith.constant 0 : i32
    return %arg1, %arg2 : i32, i32
  }
  func.func @transform_1(%arg0: i32, %arg1: i32, %arg2: i32) -> (i32, i32) {
    %c0_i32 = arith.constant 0 : i32
    return %arg2, %arg0 : i32, i32
  }
  func.func @transform_2(%arg0: i32, %arg1: i32, %arg2: i32) -> (i32, i32) {
    %c0_i32 = arith.constant 0 : i32
    %c0_i32_0 = arith.constant 0 : i32
    return %c0_i32, %arg0 : i32, i32
  }
  func.func @transform_3(%arg0: i32, %arg1: i32, %arg2: i32) -> (i32, i32) {
    %c0_i32 = arith.constant 0 : i32
    return %arg1, %arg0 : i32, i32
  }
}

</mosaic_0001>

<bundles_post_ra>
// kernel: tpu_custom_call.1
= control target key start
LH: loop header
LB: loop body
LE: loop exit
PB: predicated region body
PF: predicated region fallthrough
CT: control target
= control target key end

     0   :  { %8 = vsyncpa [#allocation4], 0  ;;  %s929_s0 = inlined_call_operand.hbm [shape: f32[64,128], index: 0, kind: input, shape index: {}]   ;;  %s930_s1 = inlined_call_operand.hbm [shape: f32[128,512], index: 1, kind: input, shape index: {}]   ;;  %s931_s2 = inlined_call_operand.hbm [shape: f32[1,512], index: 2, kind: input, shape index: {}]   ;;  %s932_s3 = inlined_call_operand.hbm [shape: f32[64,512], index: 3, kind: output, shape index: {}]  }
   0x1   :  { %9 = vsyncpa [#allocation7], 0 }
   0x2   :  { %10 = vsyncpa [#allocation5], 0  ;;  %s790_s12 = smov [#allocation6]   ;;  %s696_s16 = scalar_lea.hbm %s930_s1, 8192 }
   0x3   :  { %s28_s13 = sshll.u32 %s790_s12, 4  ;;  %p697_p0 = scmp.ne.s32.totalorder %s930_s1, %s696_s16  ;;  %s29_s13 = int_to_ptr.vmem [resolvable:$true] %s28_s13 }
   0x4   :  { %p700_p1 = scmp.lt.u32.totalorder %s696_s16, %s930_s1 }
   0x6   :  { %p702_p2 = pnand %p700_p1, %p697_p0 }
   0x8   :  { %705 = shalt.err (!%p702_p2)
}
   0x9   :  { %s706_s21 = scalar_lea.vmem %s29_s13, 8192  ;;  %p711_p4 = scmp.lt.s32.totalorder %s29_s13, %s29_s13 }
   0xa   :  { %p707_p3 = scmp.ne.s32.totalorder %s29_s13, %s706_s21  ;;  %p712_p5 = scmp.lt.s32.totalorder %s706_s21, %s706_s21 }
   0xc   :  { %p713_p6 = por %p712_p5, %p711_p4 }
   0xe   :  { %p714_p7 = pnand %p713_p6, %p707_p3 }
  0x10   :  { %717 = shalt.err (!%p714_p7)
}
  0x11   :  { %s791_s22 = smov 512   ;;  %s792_s23 = smov 32  }
  0x12   :  { %34 = dma.hbm_to_vmem [thread:$0]  %s930_s1, 8192, %s29_s13, [#allocation7], %s791_s22, %s791_s22, %s792_s23  }
  0x13   :  { %s793_s26 = smov [#allocation3]   ;;  %s718_s30 = scalar_lea.hbm %s929_s0, 1024 }
  0x14   :  { %s16_s27 = sshll.u32 %s793_s26, 4  ;;  %p719_p8 = scmp.ne.s32.totalorder %s929_s0, %s718_s30  ;;  %s17_s27 = int_to_ptr.vmem [resolvable:$true] %s16_s27 }
  0x15   :  { %p722_p9 = scmp.lt.u32.totalorder %s718_s30, %s929_s0 }
  0x17   :  { %p724_p10 = pnand %p722_p9, %p719_p8 }
  0x19   :  { %727 = shalt.err (!%p724_p10)
}
  0x1a   :  { %s728_s8 = scalar_lea.vmem %s17_s27, 1024  ;;  %p733_p12 = scmp.lt.s32.totalorder %s17_s27, %s17_s27 }
  0x1b   :  { %p729_p11 = scmp.ne.s32.totalorder %s17_s27, %s728_s8  ;;  %p734_p13 = scmp.lt.s32.totalorder %s728_s8, %s728_s8 }
  0x1d   :  { %p735_p0 = por %p734_p13, %p733_p12 }
  0x1f   :  { %p736_p1 = pnand %p735_p0, %p729_p11 }
  0x21   :  { %739 = shalt.err (!%p736_p1)
}
  0x22   :  { %s794_s1 = smov 128   ;;  %s795_s9 = smov 8  }
  0x23   :  { %22 = dma.hbm_to_vmem [thread:$0]  %s929_s0, 1024, %s17_s27, [#allocation4], %s794_s1, %s794_s1, %s795_s9  }
  0x24   :  { %s796_s12 = smov [#allocation8]   ;;  %s740_s16 = scalar_lea.hbm %s931_s2, 64 }
  0x25   :  { %s41_s13 = sshll.u32 %s796_s12, 4  ;;  %p741_p2 = scmp.ne.s32.totalorder %s931_s2, %s740_s16  ;;  %s42_s13 = int_to_ptr.vmem [resolvable:$true] %s41_s13 }
  0x26   :  { %p744_p3 = scmp.lt.u32.totalorder %s740_s16, %s931_s2 }
  0x28   :  { %p746_p4 = pnand %p744_p3, %p741_p2 }
  0x2a   :  { %749 = shalt.err (!%p746_p4)
}
  0x2b   :  { %s750_s21 = scalar_lea.vmem %s42_s13, 64  ;;  %p755_p6 = scmp.lt.s32.totalorder %s42_s13, %s42_s13 }
  0x2c   :  { %p751_p5 = scmp.ne.s32.totalorder %s42_s13, %s750_s21  ;;  %p756_p7 = scmp.lt.s32.totalorder %s750_s21, %s750_s21 }
  0x2e   :  { %p757_p8 = por %p756_p7, %p755_p6 }
  0x30   :  { %p758_p9 = pnand %p757_p8, %p751_p5 }
  0x32   :  { %761 = shalt.err (!%p758_p9)
}
  0x33   :  { %44 = dma.hbm_to_vmem [thread:$0]  %s931_s2, 64, %s42_s13, [#allocation7]  }
  0x34   :  { %784 = dma.done.wait [#allocation4], 1024  }
  0x35   :  { %785 = vsyncadd [#allocation4], 4294966272 }
  0x36   :  { %786 = dma.done.wait [#allocation7], 8256  }
  0x37   :  { %787 = vsyncadd [#allocation7], 4294959040  ;;  %v797_v0 = vmov 0.0   ;;  %v131_v1 = vld [vmem:[#allocation6 + $0x8] sm:$0xff]  ;;  %v133_v3 = vld [vmem:[#allocation6 + $0x18] sm:$0xff]  ;;  %s798_s2 = smov [#allocation9]  }
  0x38   :  { %258 = vmatprep.mubr.f32.mxu0 %v797_v0  ;;  %371 = vmatprep.mubr.f32.mxu1 %v797_v0  ;;  %v135_v2 = vld [vmem:[#allocation6 + $0x28] sm:$0xff]  ;;  %v137_v5 = vld [vmem:[#allocation6 + $0x38] sm:$0xff]  ;;  %v130_v6 = vld [vmem:[#allocation6] sm:$0xff]  ;;  %s610_s25 = sshll.u32 %s798_s2, 4  ;;  %s611_s25 = int_to_ptr.vmem [resolvable:$true] %s610_s25 }
  0x39   :  { %v623_v4 = vpack.c.bf16 %v135_v2, %v131_v1  ;;  %v134_v7 = vld [vmem:[#allocation6 + $0x20] sm:$0xff]  ;;  %v655_v8 = vpack.c.bf16 %v137_v5, %v133_v3  ;;  %v132_v10 = vld [vmem:[#allocation6 + $0x10] sm:$0xff]  ;;  %v139_v12 = vld [vmem:[#allocation6 + $0x48] sm:$0xff]  ;;  %s762_s26 = scalar_lea.vmem %s611_s25, 4096  ;;  %p767_p11 = scmp.lt.s32.totalorder %s611_s25, %s611_s25 }
  0x3a   :  { %v625_v9 = vpack.c.bf16 %v134_v7, %v130_v6  ;;  %v136_v11 = vld [vmem:[#allocation6 + $0x30] sm:$0xff]  ;;  %v143_v14 = vld [vmem:[#allocation6 + $0x68] sm:$0xff]  ;;  %v141_v15 = vld [vmem:[#allocation6 + $0x58] sm:$0xff]  ;;  %p763_p10 = scmp.ne.s32.totalorder %s611_s25, %s762_s26  ;;  %p768_p12 = scmp.lt.s32.totalorder %s762_s26, %s762_s26 }
  0x3b   :  { %624 = vmatprep.subr.bf16.mxu0 %v623_v4  ;;  %v657_v13 = vpack.c.bf16 %v136_v11, %v132_v10  ;;  %v145_v16 = vld [vmem:[#allocation6 + $0x78] sm:$0xff]  ;;  %656 = vmatprep.subr.bf16.mxu1 %v655_v8  ;;  %v627_v17 = vpack.c.bf16 %v143_v14, %v139_v12  ;;  %v138_v19 = vld [vmem:[#allocation6 + $0x40] sm:$0xff]  ;;  %v140_v21 = vld [vmem:[#allocation6 + $0x50] sm:$0xff] }
  0x3c   :  { %626 = vmatpush1.bf16.msra.mxu0 %v625_v9  ;;  %v659_v18 = vpack.c.bf16 %v145_v16, %v141_v15  ;;  %v142_v20 = vld [vmem:[#allocation6 + $0x60] sm:$0xff]  ;;  %v144_v23 = vld [vmem:[#allocation6 + $0x70] sm:$0xff]  ;;  %v147_v24 = vld [vmem:[#allocation6 + $0x88] sm:$0xff]  ;;  %p769_p13 = por %p768_p12, %p767_p11 }
  0x3d   :  { %658 = vmatpush1.bf16.msra.mxu1 %v657_v13  ;;  %v629_v22 = vpack.c.bf16 %v142_v20, %v138_v19  ;;  %v151_v25 = vld [vmem:[#allocation6 + $0xa8] sm:$0xff]  ;;  %628 = vmatprep.subr.bf16.mxu0 %v627_v17  ;;  %v661_v26 = vpack.c.bf16 %v144_v23, %v140_v21  ;;  %v149_v28 = vld [vmem:[#allocation6 + $0x98] sm:$0xff]  ;;  %v146_v30 = vld [vmem:[#allocation6 + $0x80] sm:$0xff] }
  0x3e   :  { %660 = vmatprep.subr.bf16.mxu1 %v659_v18  ;;  %v631_v27 = vpack.c.bf16 %v151_v25, %v147_v24  ;;  %v153_v29 = vld [vmem:[#allocation6 + $0xb8] sm:$0xff]  ;;  %v150_v32 = vld [vmem:[#allocation6 + $0xa0] sm:$0xff]  ;;  %v148_v33 = vld [vmem:[#allocation6 + $0x90] sm:$0xff]  ;;  %p770_p0 = pnand %p769_p13, %p763_p10 }
  0x3f   :  { %v663_v31 = vpack.c.bf16 %v153_v29, %v149_v28  ;;  %v152_v34 = vld [vmem:[#allocation6 + $0xb0] sm:$0xff]  ;;  %v633_v35 = vpack.c.bf16 %v150_v32, %v146_v30  ;;  %v155_v36 = vld [vmem:[#allocation6 + $0xc8] sm:$0xff]  ;;  %v157_v38 = vld [vmem:[#allocation6 + $0xd8] sm:$0xff] }
  0x40   :  { %630 = vmatpush1.bf16.msra.mxu0 %v629_v22  ;;  %v159_v37 = vld [vmem:[#allocation6 + $0xe8] sm:$0xff]  ;;  %v665_v39 = vpack.c.bf16 %v152_v34, %v148_v33  ;;  %v161_v41 = vld [vmem:[#allocation6 + $0xf8] sm:$0xff]  ;;  %v154_v42 = vld [vmem:[#allocation6 + $0xc0] sm:$0xff] }
  0x41   :  { %662 = vmatpush1.bf16.msra.mxu1 %v661_v26  ;;  %632 = vmatprep.subr.bf16.mxu0 %v631_v27  ;;  %v635_v40 = vpack.c.bf16 %v159_v37, %v155_v36  ;;  %v158_v43 = vld [vmem:[#allocation6 + $0xe0] sm:$0xff]  ;;  %v667_v44 = vpack.c.bf16 %v161_v41, %v157_v38  ;;  %v156_v45 = vld [vmem:[#allocation6 + $0xd0] sm:$0xff]  ;;  %v163_v47 = vld [vmem:[#allocation6 + $0x108] sm:$0xff] }
  0x42   :  { %664 = vmatprep.subr.bf16.mxu1 %v663_v31  ;;  %v160_v46 = vld [vmem:[#allocation6 + $0xf0] sm:$0xff]  ;;  %v167_v48 = vld [vmem:[#allocation6 + $0x128] sm:$0xff]  ;;  %v165_v49 = vld [vmem:[#allocation6 + $0x118] sm:$0xff]  ;;  %v637_v51 = vpack.c.bf16 %v158_v43, %v154_v42  ;;  %v521_v42 = vlaneseq }
  0x43   :  { %v169_v50 = vld [vmem:[#allocation6 + $0x138] sm:$0xff]  ;;  %v669_v52 = vpack.c.bf16 %v160_v46, %v156_v45  ;;  %v639_v53 = vpack.c.bf16 %v167_v48, %v163_v47  ;;  %v162_v54 = vld [vmem:[#allocation6 + $0x100] sm:$0xff]  ;;  %v164_v56 = vld [vmem:[#allocation6 + $0x110] sm:$0xff] }
  0x44   :  { %634 = vmatpush1.bf16.msra.mxu0 %v633_v35  ;;  %v166_v55 = vld [vmem:[#allocation6 + $0x120] sm:$0xff]  ;;  %v671_v57 = vpack.c.bf16 %v169_v50, %v165_v49  ;;  %v168_v58 = vld [vmem:[#allocation6 + $0x130] sm:$0xff]  ;;  %v171_v59 = vld [vmem:[#allocation6 + $0x148] sm:$0xff]  ;;  %v522_v43 = vshrl.u32 %v521_v42, 7 }
  0x45   :  { %666 = vmatpush1.bf16.msra.mxu1 %v665_v39  ;;  %636 = vmatprep.subr.bf16.mxu0 %v635_v40  ;;  %v175_v60 = vld [vmem:[#allocation6 + $0x168] sm:$0xff]  ;;  %v173_v61 = vld [vmem:[#allocation6 + $0x158] sm:$0xff]  ;;  %v641_v63 = vpack.c.bf16 %v166_v55, %v162_v54  ;;  %v673_v1 = vpack.c.bf16 %v168_v58, %v164_v56  ;;  %v170_v3 = vld [vmem:[#allocation6 + $0x140] sm:$0xff] }
  0x46   :  { %668 = vmatprep.subr.bf16.mxu1 %v667_v44  ;;  %v177_v62 = vld [vmem:[#allocation6 + $0x178] sm:$0xff]  ;;  %v643_v2 = vpack.c.bf16 %v175_v60, %v171_v59  ;;  %v174_v4 = vld [vmem:[#allocation6 + $0x160] sm:$0xff]  ;;  %v172_v5 = vld [vmem:[#allocation6 + $0x150] sm:$0xff]  ;;  %v523_v44 = vsub.s32 0, %v522_v43  ;;  %v531_v46 = vsub.s32 2, %v522_v43  ;;  %v527_v47 = vsub.s32 1, %v522_v43 }
  0x47   :  { %v675_v6 = vpack.c.bf16 %v177_v62, %v173_v61  ;;  %v176_v7 = vld [vmem:[#allocation6 + $0x170] sm:$0xff]  ;;  %v179_v8 = vld [vmem:[#allocation6 + $0x188] sm:$0xff]  ;;  %v181_v10 = vld [vmem:[#allocation6 + $0x198] sm:$0xff]  ;;  %v645_v12 = vpack.c.bf16 %v174_v4, %v170_v3  ;;  %v535_v48 = vsub.s32 3, %v522_v43 }
  0x48   :  { %638 = vmatpush1.bf16.msra.mxu0 %v637_v51  ;;  %v183_v9 = vld [vmem:[#allocation6 + $0x1a8] sm:$0xff]  ;;  %v185_v11 = vld [vmem:[#allocation6 + $0x1b8] sm:$0xff]  ;;  %v677_v13 = vpack.c.bf16 %v176_v7, %v172_v5  ;;  %v178_v15 = vld [vmem:[#allocation6 + $0x180] sm:$0xff] }
  0x49   :  { %670 = vmatpush1.bf16.msra.mxu1 %v669_v52  ;;  %640 = vmatprep.subr.bf16.mxu0 %v639_v53  ;;  %v647_v14 = vpack.c.bf16 %v183_v9, %v179_v8  ;;  %v182_v16 = vld [vmem:[#allocation6 + $0x1a0] sm:$0xff]  ;;  %v180_v17 = vld [vmem:[#allocation6 + $0x190] sm:$0xff]  ;;  %v679_v18 = vpack.c.bf16 %v185_v11, %v181_v10  ;;  %v187_v20 = vld [vmem:[#allocation6 + $0x1c8] sm:$0xff] }
  0x4a   :  { %672 = vmatprep.subr.bf16.mxu1 %v671_v57  ;;  %v184_v19 = vld [vmem:[#allocation6 + $0x1b0] sm:$0xff]  ;;  %v191_v21 = vld [vmem:[#allocation6 + $0x1e8] sm:$0xff]  ;;  %v189_v22 = vld [vmem:[#allocation6 + $0x1d8] sm:$0xff]  ;;  %v649_v24 = vpack.c.bf16 %v182_v16, %v178_v15 }
  0x4b   :  { %v193_v23 = vld [vmem:[#allocation6 + $0x1f8] sm:$0xff]  ;;  %v681_v25 = vpack.c.bf16 %v184_v19, %v180_v17  ;;  %v651_v26 = vpack.c.bf16 %v191_v21, %v187_v20  ;;  %v186_v27 = vld [vmem:[#allocation6 + $0x1c0] sm:$0xff]  ;;  %v188_v30 = vld [vmem:[#allocation6 + $0x1d0] sm:$0xff] }
  0x4c   :  { %642 = vmatpush1.bf16.msra.mxu0 %v641_v63  ;;  %v190_v28 = vld [vmem:[#allocation6 + $0x1e0] sm:$0xff]  ;;  %v683_v29 = vpack.c.bf16 %v193_v23, %v189_v22  ;;  %v192_v31 = vld [vmem:[#allocation6 + $0x1f0] sm:$0xff]  ;;  %v123_v35 = vld [vmem:[#allocation3 + $0x8] sm:$0xff] }
  0x4d   :  { %674 = vmatpush1.bf16.msra.mxu1 %v673_v1  ;;  %644 = vmatprep.subr.bf16.mxu0 %v643_v2  ;;  %v653_v32 = vpack.c.bf16 %v190_v28, %v186_v27  ;;  %v685_v33 = vpack.c.bf16 %v192_v31, %v188_v30  ;;  %v122_v34 = vld [vmem:[#allocation3] sm:$0xff]  ;;  %v124_v36 = vld [vmem:[#allocation3 + $0x10] sm:$0xff]  ;;  %v125_v37 = vld [vmem:[#allocation3 + $0x18] sm:$0xff] }
  0x4e   :  { %676 = vmatprep.subr.bf16.mxu1 %v675_v6  ;;  %v126_v38 = vld [vmem:[#allocation3 + $0x20] sm:$0xff]  ;;  %v127_v39 = vld [vmem:[#allocation3 + $0x28] sm:$0xff]  ;;  %v128_v40 = vld [vmem:[#allocation3 + $0x30] sm:$0xff] }
  0x4f   :  { %v129_v41 = vld [vmem:[#allocation3 + $0x38] sm:$0xff]  ;;  %v519_v45 = vld [vmem:[#allocation8] sm:$0xf] }
  0x50   :  { %646 = vmatpush1.bf16.msra.mxu0 %v645_v12  ;;  %v874_v49 = vrot.slane %v519_v45, %v523_v44  ;;  %v876_v50 = vrot.slane %v519_v45, %v531_v46  ;;  %v878_v51 = vrot.slane %v519_v45, %v527_v47  ;;  %v880_v52 = vrot.slane %v519_v45, %v535_v48 }
  0x51   :  { %678 = vmatpush1.bf16.msra.mxu1 %v677_v13  ;;  %648 = vmatprep.subr.bf16.mxu0 %v647_v14 }
  0x52   :  { %680 = vmatprep.subr.bf16.mxu1 %v679_v18 }
  0x54   :  { %650 = vmatpush1.bf16.msra.mxu0 %v649_v24 }
  0x55   :  { %682 = vmatpush1.bf16.msra.mxu1 %v681_v25  ;;  %652 = vmatprep.subr.bf16.mxu0 %v651_v26 }
  0x56   :  { %684 = vmatprep.subr.bf16.mxu1 %v683_v29 }
  0x58   :  { %654 = vmatpush1.bf16.msra.mxu0 %v653_v32 }
  0x59   :  { %686 = vmatpush1.bf16.msra.mxu1 %v685_v33 }
  0x5b   :  { %259 = vmatmul.mubr.f32.vlgmr.msra.gmra.mrb[0].mxu0 %v122_v34 }
  0x5c   :  { %372 = vmatmul.mubr.f32.vlgmr.msra.gmra.mrb[0].mxu1 %v122_v34  ;;  %264 = vmatprep.mubr.f32.mxu0 %v797_v0 }
  0x5d   :  { %377 = vmatprep.mubr.f32.mxu1 %v797_v0 }
  0x5f   :  { %265 = vmatmul.mubr.f32.gmra.mrb[2].mxu0 %v123_v35 }
  0x60   :  { %378 = vmatmul.mubr.f32.gmra.mrb[2].mxu1 %v123_v35  ;;  %270 = vmatprep.mubr.f32.mxu0 %v797_v0 }
  0x61   :  { %383 = vmatprep.mubr.f32.mxu1 %v797_v0 }
  0x63   :  { %271 = vmatmul.mubr.f32.gmra.mrb[4].mxu0 %v124_v36 }
  0x64   :  { %384 = vmatmul.mubr.f32.gmra.mrb[4].mxu1 %v124_v36  ;;  %276 = vmatprep.mubr.f32.mxu0 %v797_v0 }
  0x65   :  { %389 = vmatprep.mubr.f32.mxu1 %v797_v0 }
  0x67   :  { %277 = vmatmul.mubr.f32.gmra.mrb[6].mxu0 %v125_v37 }
  0x68   :  { %390 = vmatmul.mubr.f32.gmra.mrb[6].mxu1 %v125_v37  ;;  %282 = vmatprep.mubr.f32.mxu0 %v797_v0 }
  0x69   :  { %395 = vmatprep.mubr.f32.mxu1 %v797_v0 }
  0x6b   :  { %283 = vmatmul.mubr.f32.gmra.mrb[8].mxu0 %v126_v38 }
  0x6c   :  { %396 = vmatmul.mubr.f32.gmra.mrb[8].mxu1 %v126_v38  ;;  %288 = vmatprep.mubr.f32.mxu0 %v797_v0 }
  0x6d   :  { %401 = vmatprep.mubr.f32.mxu1 %v797_v0 }
  0x6f   :  { %289 = vmatmul.mubr.f32.gmra.mrb[10].mxu0 %v127_v39 }
  0x70   :  { %402 = vmatmul.mubr.f32.gmra.mrb[10].mxu1 %v127_v39  ;;  %294 = vmatprep.mubr.f32.mxu0 %v797_v0 }
  0x71   :  { %407 = vmatprep.mubr.f32.mxu1 %v797_v0 }
  0x73   :  { %295 = vmatmul.mubr.f32.gmra.mrb[12].mxu0 %v128_v40 }
  0x74   :  { %408 = vmatmul.mubr.f32.gmra.mrb[12].mxu1 %v128_v40  ;;  %300 = vmatprep.mubr.f32.mxu0 %v797_v0 }
  0x75   :  { %413 = vmatprep.mubr.f32.mxu1 %v797_v0 }
  0x77   :  { %301 = vmatmul.mubr.f32.gmra.mrb[14].mxu0 %v129_v41 }
  0x78   :  { %414 = vmatmul.mubr.f32.gmra.mrb[14].mxu1 %v129_v41 }
 0x12e   :  { %v260_v53 = vpop.f32.mrb[0].mxu0 }
 0x12f   :  { %v541_v0 = vadd.f32 %v874_v49, %v260_v53  ;;  %v373_v54 = vpop.f32.mrb[0].mxu1  ;;  %v262_v55 = vpop.f32.mrb[1].mxu0 }
 0x130   :  { %v543_v56 = vadd.f32 %v876_v50, %v373_v54  ;;  %v542_v57 = vadd.f32 %v878_v51, %v262_v55  ;;  %v375_v58 = vpop.f32.mrb[1].mxu1 }
 0x131   :  { %573 = vst [vmem:[#allocation9] sm:$0xff] %v541_v0  ;;  %v544_v59 = vadd.f32 %v880_v52, %v375_v58 }
 0x132   :  { %575 = vst [vmem:[#allocation9 + $0x10] sm:$0xff] %v543_v56  ;;  %574 = vst [vmem:[#allocation9 + $0x8] sm:$0xff] %v542_v57  ;;  %v266_v60 = vpop.f32.mrb[2].mxu0 }
 0x133   :  { %576 = vst [vmem:[#allocation9 + $0x18] sm:$0xff] %v544_v59  ;;  %v545_v61 = vadd.f32 %v874_v49, %v266_v60  ;;  %v379_v62 = vpop.f32.mrb[2].mxu1  ;;  %v268_v63 = vpop.f32.mrb[3].mxu0 }
 0x134   :  { %v547_v1 = vadd.f32 %v876_v50, %v379_v62  ;;  %v546_v2 = vadd.f32 %v878_v51, %v268_v63  ;;  %v381_v3 = vpop.f32.mrb[3].mxu1 }
 0x135   :  { %577 = vst [vmem:[#allocation9 + $0x20] sm:$0xff] %v545_v61  ;;  %v548_v4 = vadd.f32 %v880_v52, %v381_v3 }
 0x136   :  { %579 = vst [vmem:[#allocation9 + $0x30] sm:$0xff] %v547_v1  ;;  %578 = vst [vmem:[#allocation9 + $0x28] sm:$0xff] %v546_v2  ;;  %v272_v5 = vpop.f32.mrb[4].mxu0 }
 0x137   :  { %580 = vst [vmem:[#allocation9 + $0x38] sm:$0xff] %v548_v4  ;;  %v549_v6 = vadd.f32 %v874_v49, %v272_v5  ;;  %v385_v7 = vpop.f32.mrb[4].mxu1  ;;  %v274_v8 = vpop.f32.mrb[5].mxu0 }
 0x138   :  { %v551_v9 = vadd.f32 %v876_v50, %v385_v7  ;;  %v550_v10 = vadd.f32 %v878_v51, %v274_v8  ;;  %v387_v11 = vpop.f32.mrb[5].mxu1 }
 0x139   :  { %581 = vst [vmem:[#allocation9 + $0x40] sm:$0xff] %v549_v6  ;;  %v552_v12 = vadd.f32 %v880_v52, %v387_v11 }
 0x13a   :  { %583 = vst [vmem:[#allocation9 + $0x50] sm:$0xff] %v551_v9  ;;  %582 = vst [vmem:[#allocation9 + $0x48] sm:$0xff] %v550_v10  ;;  %v278_v13 = vpop.f32.mrb[6].mxu0 }
 0x13b   :  { %584 = vst [vmem:[#allocation9 + $0x58] sm:$0xff] %v552_v12  ;;  %v553_v14 = vadd.f32 %v874_v49, %v278_v13  ;;  %v391_v15 = vpop.f32.mrb[6].mxu1  ;;  %v280_v16 = vpop.f32.mrb[7].mxu0 }
 0x13c   :  { %v555_v17 = vadd.f32 %v876_v50, %v391_v15  ;;  %v554_v18 = vadd.f32 %v878_v51, %v280_v16  ;;  %v393_v19 = vpop.f32.mrb[7].mxu1 }
 0x13d   :  { %585 = vst [vmem:[#allocation9 + $0x60] sm:$0xff] %v553_v14  ;;  %v556_v20 = vadd.f32 %v880_v52, %v393_v19 }
 0x13e   :  { %587 = vst [vmem:[#allocation9 + $0x70] sm:$0xff] %v555_v17  ;;  %586 = vst [vmem:[#allocation9 + $0x68] sm:$0xff] %v554_v18  ;;  %v284_v21 = vpop.f32.mrb[8].mxu0 }
 0x13f   :  { %588 = vst [vmem:[#allocation9 + $0x78] sm:$0xff] %v556_v20  ;;  %v557_v22 = vadd.f32 %v874_v49, %v284_v21  ;;  %v397_v23 = vpop.f32.mrb[8].mxu1  ;;  %v286_v24 = vpop.f32.mrb[9].mxu0 }
 0x140   :  { %v559_v25 = vadd.f32 %v876_v50, %v397_v23  ;;  %v558_v26 = vadd.f32 %v878_v51, %v286_v24  ;;  %v399_v27 = vpop.f32.mrb[9].mxu1 }
 0x141   :  { %589 = vst [vmem:[#allocation9 + $0x80] sm:$0xff] %v557_v22  ;;  %v560_v28 = vadd.f32 %v880_v52, %v399_v27 }
 0x142   :  { %591 = vst [vmem:[#allocation9 + $0x90] sm:$0xff] %v559_v25  ;;  %590 = vst [vmem:[#allocation9 + $0x88] sm:$0xff] %v558_v26  ;;  %v290_v29 = vpop.f32.mrb[10].mxu0 }
 0x143   :  { %592 = vst [vmem:[#allocation9 + $0x98] sm:$0xff] %v560_v28  ;;  %v561_v30 = vadd.f32 %v874_v49, %v290_v29  ;;  %v403_v31 = vpop.f32.mrb[10].mxu1  ;;  %v292_v32 = vpop.f32.mrb[11].mxu0 }
 0x144   :  { %v563_v33 = vadd.f32 %v876_v50, %v403_v31  ;;  %v562_v34 = vadd.f32 %v878_v51, %v292_v32  ;;  %v405_v35 = vpop.f32.mrb[11].mxu1 }
 0x145   :  { %593 = vst [vmem:[#allocation9 + $0xa0] sm:$0xff] %v561_v30  ;;  %v564_v36 = vadd.f32 %v880_v52, %v405_v35 }
 0x146   :  { %595 = vst [vmem:[#allocation9 + $0xb0] sm:$0xff] %v563_v33  ;;  %594 = vst [vmem:[#allocation9 + $0xa8] sm:$0xff] %v562_v34  ;;  %v296_v37 = vpop.f32.mrb[12].mxu0 }
 0x147   :  { %596 = vst [vmem:[#allocation9 + $0xb8] sm:$0xff] %v564_v36  ;;  %v565_v38 = vadd.f32 %v874_v49, %v296_v37  ;;  %v409_v39 = vpop.f32.mrb[12].mxu1  ;;  %v298_v40 = vpop.f32.mrb[13].mxu0 }
 0x148   :  { %v567_v41 = vadd.f32 %v876_v50, %v409_v39  ;;  %v566_v42 = vadd.f32 %v878_v51, %v298_v40  ;;  %v411_v43 = vpop.f32.mrb[13].mxu1 }
 0x149   :  { %597 = vst [vmem:[#allocation9 + $0xc0] sm:$0xff] %v565_v38  ;;  %v568_v44 = vadd.f32 %v880_v52, %v411_v43 }
 0x14a   :  { %599 = vst [vmem:[#allocation9 + $0xd0] sm:$0xff] %v567_v41  ;;  %598 = vst [vmem:[#allocation9 + $0xc8] sm:$0xff] %v566_v42  ;;  %v302_v45 = vpop.f32.mrb[14].mxu0 }
 0x14b   :  { %600 = vst [vmem:[#allocation9 + $0xd8] sm:$0xff] %v568_v44  ;;  %v569_v46 = vadd.f32 %v874_v49, %v302_v45  ;;  %v415_v47 = vpop.f32.mrb[14].mxu1  ;;  %v304_v48 = vpop.f32.mrb[15].mxu0 }
 0x14c   :  { %v571_v53 = vadd.f32 %v876_v50, %v415_v47  ;;  %v570_v0 = vadd.f32 %v878_v51, %v304_v48  ;;  %v417_v54 = vpop.f32.mrb[15].mxu1 }
 0x14d   :  { %601 = vst [vmem:[#allocation9 + $0xe0] sm:$0xff] %v569_v46  ;;  %v572_v55 = vadd.f32 %v880_v52, %v417_v54 }
 0x14e   :  { %603 = vst [vmem:[#allocation9 + $0xf0] sm:$0xff] %v571_v53  ;;  %602 = vst [vmem:[#allocation9 + $0xe8] sm:$0xff] %v570_v0 }
 0x14f   :  { %604 = vst [vmem:[#allocation9 + $0xf8] sm:$0xff] %v572_v55 }
 0x150   :  { %773 = shalt.err (!%p770_p0)
}
 0x151   :  { %s774_s29 = scalar_lea.hbm %s932_s3, 4096 }
 0x152   :  { %p775_p1 = scmp.ne.s32.totalorder %s932_s3, %s774_s29  ;;  %p778_p2 = scmp.lt.u32.totalorder %s774_s29, %s932_s3 }
 0x154   :  { %p780_p3 = pnand %p778_p2, %p775_p1 }
 0x156   :  { %783 = shalt.err (!%p780_p3)
}
 0x157   :  { %616 = dma.vmem_to_hbm [thread:$0]  %s611_s25, 4096, %s932_s3, [#allocation5], %s791_s22, %s791_s22, %s792_s23  }
 0x158   :  { %788 = dma.done.wait [#allocation5], 4096  }
 0x159   :  { %789 = vsyncadd [#allocation5], 4294963200 }
 0x15a   :  { %620 = vsyncpa [#allocation4], 1 }
 0x15b   :  { %621 = vsyncpa [#allocation7], 1 }
 0x15c   :  { %622 = vsyncpa [#allocation5], 1 }

</bundles_post_ra>
